<compile_context>
chip_gen: v6e
topology: v6e:2x2x1
jax: 0.10.0
libtpu: 0.0.40
codegen_flags: <defaults>
</compile_context>

<pallas_src>
import numpy as np
import jax
import jax.numpy as jnp
from jax.experimental import pallas as pl
from jax.experimental.pallas import tpu as pltpu


def _bilinear_matrix(out_size: int, in_size: int) -> np.ndarray:
    """Row-stochastic (out,in) matrix R so that R @ v == F.interpolate(v,
    mode='bilinear', align_corners=False) along one axis."""
    if out_size == in_size:
        return np.eye(out_size, dtype=np.float32)
    scale = in_size / out_size
    o = np.arange(out_size)
    s = np.maximum((o + 0.5) * scale - 0.5, 0.0)
    i0 = np.minimum(np.floor(s).astype(np.int64), in_size - 1)
    i1 = np.minimum(i0 + 1, in_size - 1)
    lam = (s - i0).astype(np.float32)
    R = np.zeros((out_size, in_size), dtype=np.float32)
    R[o, i0] += (1.0 - lam)
    R[o, i1] += lam
    return R


def _make_fused_kernel(n_sides, needs_resize):
    """Kernel arg order: bias(SMEM), w_0..w_{n-1}, x_0..x_{n-1},
    mT for each side that needs a resize, out_ref."""
    n_resize = sum(needs_resize)

    def kernel(*refs):
        bias_ref = refs[0]                                     # SMEM (1,)
        w_refs = refs[1:1 + n_sides]                           # (1, C_i, 1) f32
        x_refs = refs[1 + n_sides:1 + 2 * n_sides]             # (N, C_i, HW_i)
        mT_refs = refs[1 + 2 * n_sides:1 + 2 * n_sides + n_resize]
        out_ref = refs[1 + 2 * n_sides + n_resize]             # (N, HW0)

        acc = jnp.zeros(out_ref.shape, jnp.float32) + bias_ref[0]
        j = 0
        for i in range(n_sides):
            # folded 1x1 conv: broadcast-multiply + reduce over C (VPU/XLU)
            x = x_refs[i][...].astype(jnp.float32)
            y = jnp.sum(x * w_refs[i][...], axis=1)               # (N, HW_i)
            if needs_resize[i]:
                # bilinear resize == matmul with kron(Ry, Rx)^T (MXU)
                y = jnp.dot(y, mT_refs[j][...],
                            preferred_element_type=jnp.float32)   # (N, HW0)
                j += 1
            acc = acc + y
        out_ref[...] = acc

    return kernel


def init_side_head(side_in_channels, key):
    """Deterministic synthetic parameters matching SideHead.__init__ shapes."""
    n = len(side_in_channels)
    keys = jax.random.split(key, n)
    sides = []
    for c, k in zip(side_in_channels, keys):
        conv_w = jax.random.normal(k, (1, c, 1, 1), jnp.float32) / np.sqrt(c)
        bn = dict(gamma=jnp.ones((1,), jnp.float32),
                  beta=jnp.zeros((1,), jnp.float32),
                  mean=jnp.zeros((1,), jnp.float32),
                  var=jnp.ones((1,), jnp.float32),
                  eps=1e-5)
        sides.append(dict(conv_w=conv_w, bn=bn))
    return {"mix": jnp.full((n,), 1.0 / n, jnp.float32), "sides": sides}


def side_head_forward(params, *cs):
    w = jax.nn.softmax(params["mix"], axis=0)
    N, _, H0, W0 = cs[0].shape
    HW0 = H0 * W0

    bias_total = jnp.zeros((), jnp.float32)
    w_in, x_in, mT_in, needs_resize = [], [], [], []
    for i, (x, side) in enumerate(zip(cs, params["sides"])):
        bn = side["bn"]
        scale = bn["gamma"][0] / jnp.sqrt(bn["var"][0] + bn["eps"])
        bias = bn["beta"][0] - scale * bn["mean"][0]
        bias_total = bias_total + w[i] * bias

        _, C, H, W_ = x.shape
        # fold softmax mix weight + eval-mode BN scale into the 1x1 conv
        w_eff = (w[i] * scale) * side["conv_w"].reshape(-1)          # (C,)
        w_in.append(w_eff.reshape(1, C, 1).astype(jnp.float32))
        x_in.append(x.reshape(N, C, H * W_))                         # native dtype

        if (H, W_) == (H0, W0):
            needs_resize.append(False)      # identity resize: skip the matmul
        else:
            needs_resize.append(True)
            ry = _bilinear_matrix(H0, H)
            rx = _bilinear_matrix(W0, W_)
            mT_in.append(jnp.asarray(np.kron(ry, rx).T))             # (HW_i, HW0)

    bias_arr = bias_total.astype(jnp.float32).reshape(1)

    kernel = _make_fused_kernel(len(cs), tuple(needs_resize))
    n_vmem_inputs = len(w_in) + len(x_in) + len(mT_in)
    out = pl.pallas_call(
        kernel,
        out_shape=jax.ShapeDtypeStruct((N, HW0), jnp.float32),
        in_specs=(
            [pl.BlockSpec(memory_space=pltpu.MemorySpace.SMEM)]
            + [pl.BlockSpec(memory_space=pltpu.MemorySpace.VMEM)] * n_vmem_inputs
        ),
        out_specs=pl.BlockSpec(memory_space=pltpu.MemorySpace.VMEM),
    )(bias_arr, *w_in, *x_in, *mT_in)
    return out.reshape(N, 1, H0, W0)


def side_head_reference(params, *cs):
    """Pure-JAX reference (same math, no Pallas)."""
    w = jax.nn.softmax(params["mix"], axis=0)
    N, _, H0, W0 = cs[0].shape
    p = jnp.zeros((N, 1, H0, W0), jnp.float32)
    for i, (x, side) in enumerate(zip(cs, params["sides"])):
        bn = side["bn"]
        scale = bn["gamma"][0] / jnp.sqrt(bn["var"][0] + bn["eps"])
        bias = bn["beta"][0] - scale * bn["mean"][0]
        cw = side["conv_w"].reshape(-1)
        y = jnp.einsum("nchw,c->nhw", x.astype(jnp.float32), cw) * scale + bias
        ry = jnp.asarray(_bilinear_matrix(H0, x.shape[2]))
        rx = jnp.asarray(_bilinear_matrix(W0, x.shape[3]))
        z = jnp.einsum("oh,nhw,pw->nop", ry, y, rx)
        p = p + w[i] * z[:, None, :, :]
    return p


if __name__ == "__main__":
    key = jax.random.PRNGKey(0)
    side_in_channels = [4, 8, 16]
    spatial = [16, 8, 4]          # cs[0] sets the output size; others upsampled
    batch = 2

    kp, k1, k2, k3 = jax.random.split(key, 4)
    params = init_side_head(side_in_channels, kp)
    cs = [
        jax.random.normal(k, (batch, c, s, s), jnp.float32)
        for k, c, s in zip((k1, k2, k3), side_in_channels, spatial)
    ]

    out = jax.block_until_ready(side_head_forward(params, *cs))
    ref = jax.block_until_ready(side_head_reference(params, *cs))

    assert out.shape == (batch, 1, spatial[0], spatial[0]), out.shape
    np.testing.assert_allclose(np.asarray(out), np.asarray(ref),
                               rtol=2e-2, atol=2e-2)
    print("KERNEL_OK")
</pallas_src>

<mosaic_0001>
module attributes {stable_mosaic.version = 11 : i64} {
  func.func @kernel(%arg0: memref<1xf32, #tpu.memory_space<smem>>, %arg1: memref<1x4x1xf32, #tpu.memory_space<vmem>>, %arg2: memref<1x8x1xf32, #tpu.memory_space<vmem>>, %arg3: memref<1x16x1xf32, #tpu.memory_space<vmem>>, %arg4: memref<2x4x256xf32, #tpu.memory_space<vmem>>, %arg5: memref<2x8x64xf32, #tpu.memory_space<vmem>>, %arg6: memref<2x16x16xf32, #tpu.memory_space<vmem>>, %arg7: memref<64x256xf32, #tpu.memory_space<vmem>>, %arg8: memref<16x256xf32, #tpu.memory_space<vmem>>, %arg9: memref<2x256xf32, #tpu.memory_space<vmem>>) attributes {dimension_semantics = [], scalar_prefetch = 0 : i64, scratch_operands = 0 : i64, tpu.core_type = #tpu.core_type<tc>} {
    %cst = arith.constant 0.000000e+00 : f32
    %0 = vector.broadcast %cst : f32 to vector<2x256xf32>
    %c0 = arith.constant 0 : index
    %1 = memref.load %arg0[%c0] : memref<1xf32, #tpu.memory_space<smem>>
    %2 = vector.broadcast %1 : f32 to vector<2x256xf32>
    %3 = arith.addf %0, %2 : vector<2x256xf32>
    %c0_0 = arith.constant 0 : index
    %c0_1 = arith.constant 0 : index
    %c0_2 = arith.constant 0 : index
    %4 = vector.load %arg4[%c0_0, %c0_1, %c0_2] : memref<2x4x256xf32, #tpu.memory_space<vmem>>, vector<2x4x256xf32>
    %c0_3 = arith.constant 0 : index
    %c0_4 = arith.constant 0 : index
    %c0_5 = arith.constant 0 : index
    %5 = vector.load %arg1[%c0_3, %c0_4, %c0_5] : memref<1x4x1xf32, #tpu.memory_space<vmem>>, vector<1x4x1xf32>
    %6 = vector.broadcast %5 : vector<1x4x1xf32> to vector<2x4x256xf32>
    %7 = arith.mulf %4, %6 : vector<2x4x256xf32>
    %cst_6 = arith.constant dense<0.000000e+00> : vector<2x256xf32>
    %8 = vector.multi_reduction <add>, %7, %cst_6 [1] : vector<2x4x256xf32> to vector<2x256xf32>
    %9 = arith.addf %3, %8 : vector<2x256xf32>
    %c0_7 = arith.constant 0 : index
    %c0_8 = arith.constant 0 : index
    %c0_9 = arith.constant 0 : index
    %10 = vector.load %arg5[%c0_7, %c0_8, %c0_9] : memref<2x8x64xf32, #tpu.memory_space<vmem>>, vector<2x8x64xf32>
    %c0_10 = arith.constant 0 : index
    %c0_11 = arith.constant 0 : index
    %c0_12 = arith.constant 0 : index
    %11 = vector.load %arg2[%c0_10, %c0_11, %c0_12] : memref<1x8x1xf32, #tpu.memory_space<vmem>>, vector<1x8x1xf32>
    %12 = vector.broadcast %11 : vector<1x8x1xf32> to vector<2x8x64xf32>
    %13 = arith.mulf %10, %12 : vector<2x8x64xf32>
    %cst_13 = arith.constant dense<0.000000e+00> : vector<2x64xf32>
    %14 = vector.multi_reduction <add>, %13, %cst_13 [1] : vector<2x8x64xf32> to vector<2x64xf32>
    %c0_14 = arith.constant 0 : index
    %c0_15 = arith.constant 0 : index
    %15 = vector.load %arg7[%c0_14, %c0_15] : memref<64x256xf32, #tpu.memory_space<vmem>>, vector<64x256xf32>
    %cst_16 = arith.constant dense<0.000000e+00> : vector<2x256xf32>
    %16 = tpu.matmul %14, %15, %cst_16 {dimension_numbers = #tpu.dot_dimension_numbers<[1], [0], [0], [1], [0, 0, 1, 1], [], []>} : vector<2x64xf32>, vector<64x256xf32>, vector<2x256xf32> -> vector<2x256xf32>
    %17 = arith.addf %9, %16 : vector<2x256xf32>
    %c0_17 = arith.constant 0 : index
    %c0_18 = arith.constant 0 : index
    %c0_19 = arith.constant 0 : index
    %18 = vector.load %arg6[%c0_17, %c0_18, %c0_19] : memref<2x16x16xf32, #tpu.memory_space<vmem>>, vector<2x16x16xf32>
    %c0_20 = arith.constant 0 : index
    %c0_21 = arith.constant 0 : index
    %c0_22 = arith.constant 0 : index
    %19 = vector.load %arg3[%c0_20, %c0_21, %c0_22] : memref<1x16x1xf32, #tpu.memory_space<vmem>>, vector<1x16x1xf32>
    %20 = vector.broadcast %19 : vector<1x16x1xf32> to vector<2x16x16xf32>
    %21 = arith.mulf %18, %20 : vector<2x16x16xf32>
    %cst_23 = arith.constant dense<0.000000e+00> : vector<2x16xf32>
    %22 = vector.multi_reduction <add>, %21, %cst_23 [1] : vector<2x16x16xf32> to vector<2x16xf32>
    %c0_24 = arith.constant 0 : index
    %c0_25 = arith.constant 0 : index
    %23 = vector.load %arg8[%c0_24, %c0_25] : memref<16x256xf32, #tpu.memory_space<vmem>>, vector<16x256xf32>
    %cst_26 = arith.constant dense<0.000000e+00> : vector<2x256xf32>
    %24 = tpu.matmul %22, %23, %cst_26 {dimension_numbers = #tpu.dot_dimension_numbers<[1], [0], [0], [1], [0, 0, 1, 1], [], []>} : vector<2x16xf32>, vector<16x256xf32>, vector<2x256xf32> -> vector<2x256xf32>
    %25 = arith.addf %17, %24 : vector<2x256xf32>
    %c0_27 = arith.constant 0 : index
    %c0_28 = arith.constant 0 : index
    %26 = vector.load %arg9[%c0_27, %c0_28] : memref<2x256xf32, #tpu.memory_space<vmem>>, vector<2x256xf32>
    tpu.vector_store %arg9[%c0_27, %c0_28], %25 {strides = array<i32>} : memref<2x256xf32, #tpu.memory_space<vmem>>, vector<2x256xf32>,
    return
  }
}

</mosaic_0001>

<bundles_post_ra>
// kernel: tpu_custom_call.1
= control target key start
LH: loop header
LB: loop body
LE: loop exit
PB: predicated region body
PF: predicated region fallthrough
CT: control target
= control target key end

     0   :  { %15 = vsyncpa [#allocation4], 0  ;;  %s705_s0 = inlined_call_operand.<no memory space> [shape: f32[1], index: 0, kind: input, shape index: {}]   ;;  %s706_s1 = inlined_call_operand.vmem [shape: f32[1,4,1], index: 1, kind: input, shape index: {}]   ;;  %s707_s2 = inlined_call_operand.vmem [shape: f32[1,8,1], index: 2, kind: input, shape index: {}]   ;;  %s708_s3 = inlined_call_operand.vmem [shape: f32[1,16,1], index: 3, kind: input, shape index: {}]   ;;  %s709_s4 = inlined_call_operand.hbm [shape: f32[2,4,256], index: 4, kind: input, shape index: {}]   ;;  %s710_s5 = inlined_call_operand.hbm [shape: f32[2,8,64], index: 5, kind: input, shape index: {}]   ;;  %s711_s6 = inlined_call_operand.vmem [shape: f32[2,16,16], index: 6, kind: input, shape index: {}]   ;;  %s712_s7 = inlined_call_operand.hbm [shape: f32[64,256], index: 7, kind: input, shape index: {}]   ;;  %s713_s8 = inlined_call_operand.hbm [shape: f32[16,256], index: 8, kind: input, shape index: {}]   ;;  %s714_s9 = inlined_call_operand.hbm [shape: f32[2,256], index: 9, kind: output, shape index: {}]  }
   0x1   :  { %16 = vsyncpa [#allocation7], 0 }
   0x2   :  { %17 = vsyncpa [#allocation10], 0 }
   0x3   :  { %18 = vsyncpa [#allocation5], 0  ;;  %s585_s30 = smov [#allocation6]   ;;  %s586_s11 = smov [#allocation3]  }
   0x4   :  { %s44_s10 = sshll.u32 %s585_s30, 4  ;;  %s32_s12 = sshll.u32 %s586_s11, 4  ;;  %s45_s10 = int_to_ptr.vmem [resolvable:$true] %s44_s10  ;;  %s33_s12 = int_to_ptr.vmem [resolvable:$true] %s32_s12 }
   0x5   :  { %s485_s13 = scalar_lea.vmem %s45_s10, 256  ;;  %p490_p1 = scmp.lt.s32.totalorder %s45_s10, %s45_s10 }
   0x6   :  { %p486_p0 = scmp.ne.s32.totalorder %s45_s10, %s485_s13  ;;  %p491_p2 = scmp.lt.s32.totalorder %s485_s13, %s485_s13 }
   0x8   :  { %p492_p3 = por %p491_p2, %p490_p1 }
   0xa   :  { %p493_p4 = pnand %p492_p3, %p486_p0 }
   0xc   :  { %496 = shalt.err (!%p493_p4)
}
   0xd   :  { %s587_s14 = smov 128   ;;  %s588_s15 = smov 8  }
   0xe   :  { %50 = dma.hbm_to_vmem [thread:$0]  %s710_s5, 256, %s45_s10, [#allocation7], %s587_s14, %s587_s14, %s588_s15  }
   0xf   :  { %s505_s18 = scalar_lea.vmem %s33_s12, 256  ;;  %p510_p6 = scmp.lt.s32.totalorder %s33_s12, %s33_s12 }
  0x10   :  { %p506_p5 = scmp.ne.s32.totalorder %s33_s12, %s505_s18  ;;  %p511_p7 = scmp.lt.s32.totalorder %s505_s18, %s505_s18 }
  0x12   :  { %p512_p8 = por %p511_p7, %p510_p6 }
  0x14   :  { %p513_p9 = pnand %p512_p8, %p506_p5 }
  0x16   :  { %516 = shalt.err (!%p513_p9)
}
  0x17   :  { %38 = dma.hbm_to_vmem [thread:$0]  %s709_s4, 256, %s33_s12, [#allocation4], %s587_s14, %s587_s14, %s588_s15  }
  0x18   :  { %s589_s21 = smov [#allocation8]  }
  0x19   :  { %s58_s22 = sshll.u32 %s589_s21, 4  ;;  %s59_s22 = int_to_ptr.vmem [resolvable:$true] %s58_s22 }
  0x1a   :  { %s525_s23 = scalar_lea.vmem %s59_s22, 2048  ;;  %p530_p11 = scmp.lt.s32.totalorder %s59_s22, %s59_s22 }
  0x1b   :  { %p526_p10 = scmp.ne.s32.totalorder %s59_s22, %s525_s23  ;;  %p531_p12 = scmp.lt.s32.totalorder %s525_s23, %s525_s23 }
  0x1d   :  { %p532_p13 = por %p531_p12, %p530_p11 }
  0x1f   :  { %p533_p0 = pnand %p532_p13, %p526_p10 }
  0x21   :  { %536 = shalt.err (!%p533_p0)
}
  0x22   :  { %s590_s5 = smov 256   ;;  %s591_s24 = smov 16  }
  0x23   :  { %64 = dma.hbm_to_vmem [thread:$0]  %s712_s7, 2048, %s59_s22, [#allocation7], %s590_s5, %s590_s5, %s591_s24  }
  0x24   :  { %s592_s27 = smov [#allocation9]  }
  0x25   :  { %s70_s28 = sshll.u32 %s592_s27, 4  ;;  %s71_s28 = int_to_ptr.vmem [resolvable:$true] %s70_s28 }
  0x26   :  { %s545_s4 = scalar_lea.vmem %s71_s28, 512  ;;  %p550_p2 = scmp.lt.s32.totalorder %s71_s28, %s71_s28 }
  0x27   :  { %p546_p1 = scmp.ne.s32.totalorder %s71_s28, %s545_s4  ;;  %p551_p3 = scmp.lt.s32.totalorder %s545_s4, %s545_s4 }
  0x29   :  { %p552_p4 = por %p551_p3, %p550_p2 }
  0x2b   :  { %p553_p5 = pnand %p552_p4, %p546_p1 }
  0x2d   :  { %556 = shalt.err (!%p553_p5)
}
  0x2e   :  { %76 = dma.hbm_to_vmem [thread:$0]  %s713_s8, 512, %s71_s28, [#allocation10], %s590_s5, %s590_s5, %s591_s24  }
  0x2f   :  { %577 = dma.done.wait [#allocation4], 256  }
  0x30   :  { %578 = vsyncadd [#allocation4], 4294967040 }
  0x31   :  { %579 = dma.done.wait [#allocation7], 2304  }
  0x32   :  { %580 = vsyncadd [#allocation7], 4294964992 }
  0x33   :  { %581 = dma.done.wait [#allocation10], 512  }
  0x34   :  { %582 = vsyncadd [#allocation10], 4294966784  ;;  %v593_v0 = vmov 0   ;;  %v283_v1 = vld [vmem:[%s708_s3 + $0x8] sm:$0xff]  ;;  %v150_v2 = vld [vmem:[%s707_s2] sm:$0xff]  ;;  %v594_v18 = vmov 0.0  }
  0x35   :  { %476 = vset.pattern.permute.xlu1 %v593_v0  ;;  %475 = vset.pattern.permute.xlu0 %v593_v0  ;;  %v282_v3 = vld [vmem:[%s708_s3] sm:$0xff]  ;;  %v188_v5 = vld [vmem:[#allocation8 + $0x78] sm:$0xff]  ;;  %v187_v6 = vld [vmem:[#allocation8 + $0x70] sm:$0xff]  ;;  %vm158_vm0 = vcmask 523264   ;;  %vm298_vm1 = vcmask 130048   ;;  %vm191_vm2 = vcmask 1041409  }
  0x36   :  { %291 = vperm.xlu1 %476, %v283_v1   ;;  %153 = vperm.xlu0 %475, %v150_v2   ;;  %v94_v4 = vld [vmem:[%s706_s1] sm:$0xf]  ;;  %v186_v7 = vld [vmem:[#allocation8 + $0x68] sm:$0xff]  ;;  %v184_v9 = vld [vmem:[#allocation8 + $0x58] sm:$0xff]  ;;  %vm115_vm3 = vcmask 1043456   ;;  %vm435_vm4 = vcmask 1043459  }
  0x37   :  { %211 = vmatprep.subr.mxu0 %v188_v5  ;;  %v185_v8 = vld [vmem:[#allocation8 + $0x60] sm:$0xff]  ;;  %v183_v10 = vld [vmem:[#allocation8 + $0x50] sm:$0xff]  ;;  %v182_v11 = vld [vmem:[#allocation8 + $0x48] sm:$0xff]  ;;  %259 = vmatprep.mubr.f32.mxu0 %v594_v18  ;;  %vm437_vm5 = vcmask 1045509   ;;  %vm439_vm6 = vcmask 1047559  }
  0x38   :  { %212 = vmatpush1.msra.mxu0 %v187_v6  ;;  %v181_v12 = vld [vmem:[#allocation8 + $0x40] sm:$0xff]  ;;  %v180_v13 = vld [vmem:[#allocation8 + $0x38] sm:$0xff]  ;;  %v179_v14 = vld [vmem:[#allocation8 + $0x30] sm:$0xff]  ;;  %390 = vmatprep.mubr.f32.mxu1 %v594_v18 }
  0x39   :  { %213 = vmatprep.subr.mxu0 %v186_v7  ;;  %v178_v15 = vld [vmem:[#allocation8 + $0x28] sm:$0xff]  ;;  %v177_v16 = vld [vmem:[#allocation8 + $0x20] sm:$0xff]  ;;  %v176_v17 = vld [vmem:[#allocation8 + $0x18] sm:$0xff] }
  0x3a   :  { %286 = vperm.xlu0 %475, %v282_v3   ;;  %97 = vperm.xlu1 %476, %v94_v4   ;;  %v175_v19 = vld [vmem:[#allocation8 + $0x10] sm:$0xff]  ;;  %v174_v20 = vld [vmem:[#allocation8 + $0x8] sm:$0xff]  ;;  %v320_v21 = vld [vmem:[#allocation9 + $0x18] sm:$0xff] }
  0x3b   :  { %214 = vmatpush1.msra.mxu0 %v185_v8  ;;  %v319_v22 = vld [vmem:[#allocation9 + $0x10] sm:$0xff]  ;;  %v318_v23 = vld [vmem:[#allocation9 + $0x8] sm:$0xff]  ;;  %v173_v24 = vld [vmem:[#allocation8] sm:$0xff]  ;;  %354 = vmatprep.subr.mxu1 %v320_v21 }
  0x3c   :  { %215 = vmatprep.subr.mxu0 %v184_v9  ;;  %v317_v25 = vld [vmem:[#allocation9] sm:$0xff]  ;;  %355 = vmatpush1.msra.mxu1 %v319_v22  ;;  %v279_v26 = vld [vmem:[%s711_s6 + $0x8] sm:$0xff]  ;;  %v281_v27 = vld [vmem:[%s711_s6 + $0x18] sm:$0xff] }
  0x3d   :  { %216 = vmatpush1.msra.mxu0 %v183_v10  ;;  %356 = vmatprep.subr.mxu1 %v318_v23  ;;  %v148_v28 = vld [vmem:[#allocation6] sm:$0xff]  ;;  %v149_v29 = vld [vmem:[#allocation6 + $0x8] sm:$0xff]  ;;  %v278_v36 = vld [vmem:[%s711_s6] sm:$0xff] }
  0x3e   :  { %217 = vmatprep.subr.mxu0 %v182_v11  ;;  %357 = vmatpush1.msra.mxu1 %v317_v25  ;;  %v280_v37 = vld [vmem:[%s711_s6 + $0x10] sm:$0xff]  ;;  %v595_v11 = vmov 839922192  }
  0x3f   :  { %218 = vmatpush1.msra.mxu0 %v181_v12  ;;  %v100_v12 = vunpack.c.l.s4 %v595_v11 }
  0x40   :  { %219 = vmatprep.subr.mxu0 %v180_v13  ;;  %v102_v13 = vlaneseq }
  0x41   :  { %220 = vmatpush1.msra.mxu0 %v179_v14  ;;  %v101_v14 = vunpack.c.0.s8 %v100_v12 }
  0x42   :  { %221 = vmatprep.subr.mxu0 %v178_v15  ;;  %v694_v15 = vshrl.u32 %v102_v13, 7 }
  0x43   :  { %222 = vmatpush1.msra.mxu0 %v177_v16 }
  0x44   :  { %223 = vmatprep.subr.mxu0 %v176_v17  ;;  %v104_v16 = vsub.s32 %v101_v14, %v694_v15 }
  0x45   :  { %224 = vmatpush1.msra.mxu0 %v175_v19  ;;  %v92_v19 = vld [vmem:[#allocation3] sm:$0xff] }
  0x46   :  { %225 = vmatprep.subr.mxu0 %v174_v20  ;;  %v93_v20 = vld [vmem:[#allocation3 + $0x8] sm:$0xff] }
  0x47   :  { %226 = vmatpush1.msra.mxu0 %v173_v24 }
  0xb1   :  { %v292_v30 = vpop.permute.xlu1 %291  ;;  %v154_v31 = vpop.permute.xlu0 %153 }
  0xb2   :  { %v295_v32 = vmul.f32 %v292_v30, %v279_v26  ;;  %v297_v33 = vmul.f32 %v292_v30, %v281_v27  ;;  %v156_v34 = vmul.f32 %v154_v31, %v148_v28  ;;  %v157_v35 = vmul.f32 %v154_v31, %v149_v29 }
  0xb4   :  { %v159_v38 = vsel %vm158_vm0, %v156_v34, 0.0  ;;  %v166_v39 = vsel %vm158_vm0, %v157_v35, 0.0  ;;  %v300_v43 = vsel %vm298_vm1, %v295_v32, 0.0  ;;  %v309_v44 = vsel %vm298_vm1, %v297_v33, 0.0 }
  0xb5   :  { %v287_v40 = vpop.permute.xlu0 %286  ;;  %v160_v41 = vrot.slane %v159_v38, 4  ;;  %v167_v42 = vrot.slane %v166_v39, 4  ;;  %v98_v17 = vpop.permute.xlu1 %97 }
  0xb6   :  { %v294_v45 = vmul.f32 %v287_v40, %v278_v36  ;;  %v296_v46 = vmul.f32 %v287_v40, %v280_v37  ;;  %v105_v18 = vrot.slane %v98_v17, %v104_v16 }
  0xb7   :  { %v161_v47 = vadd.f32 %v160_v41, %v159_v38  ;;  %v168_v48 = vadd.f32 %v167_v42, %v166_v39 }
  0xb8   :  { %v299_v49 = vsel %vm298_vm1, %v294_v45, 0.0  ;;  %v308_v50 = vsel %vm298_vm1, %v296_v46, 0.0  ;;  %v107_v21 = vmul.f32 %v105_v18, %v92_v19  ;;  %v108_v22 = vmul.f32 %v105_v18, %v93_v20 }
  0xb9   :  { %v301_v51 = vadd.f32 %v300_v43, %v299_v49  ;;  %v310_v52 = vadd.f32 %v309_v44, %v308_v50  ;;  %v162_v53 = vrot.slane %v161_v47, 2  ;;  %v169_v54 = vrot.slane %v168_v48, 2 }
  0xba   :  { %v111_v23 = vcombine.high %v107_v21, %v107_v21  ;;  %v112_v24 = vcombine.high %v108_v22, %v108_v22  ;;  %v116_v26 = vsel %vm115_vm3, %v107_v21, 0.0  ;;  %v130_v27 = vsel %vm115_vm3, %v108_v22, 0.0 }
  0xbb   :  { %v302_v55 = vrot.slane %v301_v51, 4  ;;  %v311_v56 = vrot.slane %v310_v52, 4  ;;  %v163_v57 = vadd.f32 %v162_v53, %v161_v47  ;;  %v170_v58 = vadd.f32 %v169_v54, %v168_v48 }
  0xbc   :  { %v123_v25 = vsel %vm115_vm3, %v111_v23, 0.0  ;;  %v137_v28 = vsel %vm115_vm3, %v112_v24, 0.0  ;;  %v117_v30 = vrot.slane %v116_v26, 4  ;;  %v131_v31 = vrot.slane %v130_v27, 4 }
  0xbd   :  { %v303_v59 = vadd.f32 %v302_v55, %v301_v51  ;;  %v312_v60 = vadd.f32 %v311_v56, %v310_v52  ;;  %v164_v61 = vrot.slane %v163_v57, 1  ;;  %v171_v62 = vrot.slane %v170_v58, 1 }
  0xbe   :  { %v124_v29 = vrot.slane %v123_v25, 4  ;;  %v138_v32 = vrot.slane %v137_v28, 4  ;;  %v118_v34 = vadd.f32 %v117_v30, %v116_v26  ;;  %v132_v35 = vadd.f32 %v131_v31, %v130_v27 }
  0xbf   :  { %v304_v63 = vrot.slane %v303_v59, 2  ;;  %v313_v0 = vrot.slane %v312_v60, 2  ;;  %v165_v1 = vadd.f32 %v164_v61, %v163_v57  ;;  %v172_v2 = vadd.f32 %v171_v62, %v170_v58 }
  0xc0   :  { %v125_v33 = vadd.f32 %v124_v29, %v123_v25  ;;  %v139_v36 = vadd.f32 %v138_v32, %v137_v28  ;;  %v119_v38 = vrot.slane %v118_v34, 2  ;;  %v133_v39 = vrot.slane %v132_v35, 2 }
  0xc1   :  { %v305_v3 = vadd.f32 %v304_v63, %v303_v59  ;;  %v314_v4 = vadd.f32 %v313_v0, %v312_v60  ;;  %v192_v5 = vsel %vm191_vm2, %v172_v2, %v165_v1  ;;  %v90_v52 = vstv %s705_s0  ;;  %s597_s0 = smov [#allocation11]  }
  0xc2   :  { %460 = vmatmul.mubr.msk.f32.vlgmr.msra.gmra.mxu0 %vm158_vm0, %v192_v5  ;;  %v126_v37 = vrot.slane %v125_v33, 2  ;;  %v140_v40 = vrot.slane %v139_v36, 2  ;;  %v120_v42 = vadd.f32 %v119_v38, %v118_v34  ;;  %v134_v43 = vadd.f32 %v133_v39, %v132_v35  ;;  %s449_s22 = sshll.u32 %s597_s0, 4  ;;  %s450_s22 = int_to_ptr.vmem [resolvable:$true] %s449_s22 }
  0xc3   :  { %v306_v6 = vrot.slane %v305_v3, 1  ;;  %v315_v7 = vrot.slane %v314_v4, 1  ;;  %v596_v56 = vmov 1983009808   ;;  %s557_s23 = scalar_lea.vmem %s450_s22, 64  ;;  %p562_p7 = scmp.lt.s32.totalorder %s450_s22, %s450_s22 }
  0xc4   :  { %v127_v41 = vadd.f32 %v126_v37, %v125_v33  ;;  %v141_v44 = vadd.f32 %v140_v40, %v139_v36  ;;  %v121_v46 = vrot.slane %v120_v42, 1  ;;  %v135_v47 = vrot.slane %v134_v43, 1  ;;  %p558_p6 = scmp.ne.s32.totalorder %s450_s22, %s557_s23  ;;  %p563_p8 = scmp.lt.s32.totalorder %s557_s23, %s557_s23 }
  0xc5   :  { %v307_v8 = vadd.f32 %v306_v6, %v305_v3  ;;  %v316_v9 = vadd.f32 %v315_v7, %v314_v4  ;;  %v415_v57 = vunpack.c.l.s4 %v596_v56 }
  0xc6   :  { %v128_v45 = vrot.slane %v127_v41, 1  ;;  %v142_v48 = vrot.slane %v141_v44, 1  ;;  %v122_v51 = vadd.f32 %v121_v46, %v120_v42  ;;  %v136_v53 = vadd.f32 %v135_v47, %v134_v43  ;;  %p564_p9 = por %p563_p8, %p562_p7 }
  0xc7   :  { %v323_v10 = vsel %vm191_vm2, %v316_v9, %v307_v8  ;;  %v416_v5 = vunpack.c.0.s8 %v415_v57 }
  0xc8   :  { %461 = vmatmul.mubr.msk.f32.vlgmr.msra.gmra.mxu1 %vm298_vm1, %v323_v10  ;;  %v129_v50 = vadd.f32 %v128_v45, %v127_v41  ;;  %v143_v54 = vadd.f32 %v142_v48, %v141_v44  ;;  %v144_v61 = vadd.f32 %v122_v51, %v90_v52  ;;  %v146_v63 = vadd.f32 %v136_v53, %v90_v52  ;;  %p565_p10 = pnand %p564_p9, %p558_p6 }
  0xc9   :  { %v419_v14 = vsub.s32 %v416_v5, %v694_v15 }
  0xca   :  { %v145_v59 = vadd.f32 %v129_v50, %v90_v52  ;;  %v147_v0 = vadd.f32 %v143_v54, %v90_v52 }
 0x182   :  { %v261_v49 = vpop.f32.mrf.mxu0 }
 0x183   :  { %v268_v58 = vrot.slane %v261_v49, 1  ;;  %v274_v3 = vadd.f32 %v261_v49, %v144_v61 }
 0x184   :  { %v263_v55 = vpop.f32.mrf.mxu0 }
 0x185   :  { %v269_v60 = vrot.slane %v263_v55, 1  ;;  %v275_v1 = vadd.f32 %v263_v55, %v145_v59  ;;  %v276_v6 = vadd.f32 %v268_v58, %v146_v63 }
 0x187   :  { %v277_v7 = vadd.f32 %v269_v60, %v147_v0 }
 0x188   :  { %v392_v62 = vpop.f32.mrf.mxu1 }
 0x189   :  { %v399_v2 = vrot.slane %v392_v62, 1  ;;  %v405_v10 = vadd.f32 %v392_v62, %v274_v3 }
 0x18a   :  { %v394_v4 = vpop.f32.mrf.mxu1 }
 0x18b   :  { %v400_v8 = vrot.slane %v394_v4, 1  ;;  %v406_v9 = vadd.f32 %v394_v4, %v275_v1  ;;  %v407_v11 = vadd.f32 %v399_v2, %v276_v6 }
 0x18d   :  { %v408_v12 = vadd.f32 %v400_v8, %v277_v7  ;;  %v413_v13 = vcombine.low %v405_v10, %v406_v9 }
 0x18f   :  { %v421_v16 = vcombine.low %v407_v11, %v408_v12  ;;  %v420_v18 = vrot.slane %v413_v13, %v419_v14 }
 0x191   :  { %v428_v17 = vrot.slane %v421_v16, %v419_v14 }
 0x193   :  { %v433_v19 = vrot.slane %v428_v17, 7 }
 0x195   :  { %v434_v20 = vsel %vm191_vm2, %v433_v19, %v420_v18 }
 0x196   :  { %v436_v21 = vsel %vm435_vm4, %v433_v19, %v434_v20 }
 0x197   :  { %v438_v22 = vsel %vm437_vm5, %v433_v19, %v436_v21 }
 0x198   :  { %v440_v23 = vsel %vm439_vm6, %v433_v19, %v438_v22 }
 0x199   :  { %442 = vst [vmem:[#allocation11] sm:$0xf] %v440_v23 }
 0x19a   :  { %568 = shalt.err (!%p565_p10)
}
 0x19b   :  { %452 = dma.vmem_to_hbm [thread:$0]  %s450_s22, 64, %s714_s9, [#allocation5]  }
 0x19c   :  { %583 = dma.done.wait [#allocation5], 64  }
 0x19d   :  { %584 = vsyncadd [#allocation5], 4294967232 }
 0x19e   :  { %456 = vsyncpa [#allocation4], 1 }
 0x19f   :  { %457 = vsyncpa [#allocation7], 1 }
 0x1a0   :  { %458 = vsyncpa [#allocation10], 1 }
 0x1a1   :  { %459 = vsyncpa [#allocation5], 1 }

</bundles_post_ra>
